<compile_context>
chip_gen: v5e
topology: v5e:2x2
jax: 0.10.0
libtpu: 0.0.40
codegen_flags: <defaults>
</compile_context>

<pallas_src>
import functools

import jax
import jax.numpy as jnp
from jax.experimental import pallas as pl
from jax.experimental.pallas import tpu as pltpu


def _vmem_capacity_bytes():
    try:
        return int(pltpu.get_tpu_info().vmem_capacity_bytes)
    except Exception:
        return 64 * 1024 * 1024   # v7x-sized conservative fallback


_VMEM_CAP = _vmem_capacity_bytes()


def _round_up(x, m):
    return (x + m - 1) // m * m


def _mosaic_params(dimension_semantics, tile_bytes):
    """VMEM limit from the actual (double-buffered) tile footprint + headroom,
    never exceeding physical capacity (important on 64 MiB v7x)."""
    limit = max(32 << 20, 2 * int(tile_bytes) + (8 << 20))
    limit = int(min(limit, _VMEM_CAP - (8 << 20)))
    return pltpu.CompilerParams(dimension_semantics=dimension_semantics,
                                vmem_limit_bytes=limit)


def _pad_rows_cols(a, rows, cols):
    pr, pc = rows - a.shape[0], cols - a.shape[1]
    if pr == 0 and pc == 0:
        return a
    return jnp.pad(a, ((0, pr), (0, pc)))


# -----------------------------------------------------------------------------
# Kernel 1: tiled conv-as-matmul + per-tile BatchNorm partial statistics
# -----------------------------------------------------------------------------
def _mm_stats_kernel(a_ref, b_ref, y_ref, sum_ref, ssq_ref, acc_ref):
    k = pl.program_id(2)

    @pl.when(k == 0)
    def _():
        acc_ref[...] = jnp.zeros_like(acc_ref)

    # bf16 x bf16 on the MXU, f32 accumulation.
    acc_ref[...] += jnp.dot(a_ref[...], b_ref[...],
                            preferred_element_type=jnp.float32)

    @pl.when(k == pl.num_programs(2) - 1)
    def _():
        y = acc_ref[...]
        y_ref[...] = y.astype(y_ref.dtype)          # bf16 store (half the HBM)
        # Per-channel partial stats for this M tile, taken from the f32
        # accumulator.  Zero-padded rows/channels contribute exactly zero,
        # so the wrapper divides by the real row count.
        sum_ref[0] = jnp.sum(y, axis=0, keepdims=True)
        ssq_ref[0] = jnp.sum(y * y, axis=0, keepdims=True)


def _pick_mm_tiles(M, C, K):
    # K: avoid the TK=128 multi-step fallback — pad K to 256/512 multiples.
    if K <= 128:
        Kp, TK = 128, 128
    else:
        Kp = _round_up(K, 256)
        TK = 512 if Kp % 512 == 0 else 256
    Cp = _round_up(C, 128)
    TN = min(Cp, 512)
    nn = Cp // TN
    # M: largest tile that fits, but keep >= 2 blocks on a parallel axis when
    # possible so both v7x TensorCores are used (harmless on v5e/v6e).
    Mp128 = _round_up(M, 128)
    TM = 128
    for cand in (1024, 512, 256, 128):
        if cand > Mp128:
            continue
        mp = _round_up(M, cand)
        if nn < 2 and mp // cand < 2 and cand > 128 and Mp128 >= 256:
            continue
        TM = cand
        break
    Mp = _round_up(M, TM)
    return TM, TN, TK, Mp, Cp, Kp


def matmul_stats(patch_parts, M, K, w_mm):
    """(M, K) @ (K, C) -> y (Mp, Cp) bf16 plus f32 per-channel sum / sumsq over
    the M real rows.  `patch_parts` is a list of (M, k_i) bf16 chunks whose
    widths sum to K; K zero-padding is folded into the single concatenate."""
    C = w_mm.shape[1]
    TM, TN, TK, Mp, Cp, Kp = _pick_mm_tiles(M, C, K)

    parts = list(patch_parts)
    if Kp > K:
        parts.append(jnp.zeros((M, Kp - K), jnp.bfloat16))
    a = jnp.concatenate(parts, axis=1) if len(parts) > 1 else parts[0]
    a = a.astype(jnp.bfloat16)
    if Mp > M:
        a = jnp.pad(a, ((0, Mp - M), (0, 0)))
    b = _pad_rows_cols(w_mm.astype(jnp.bfloat16), Kp, Cp)

    nm, nn, nk = Mp // TM, Cp // TN, Kp // TK
    tile_bytes = (TM * TK + TK * TN + TM * TN) * 2 + TM * TN * 4 + 4 * TN * 4

    y, psum, pssq = pl.pallas_call(
        _mm_stats_kernel,
        grid=(nm, nn, nk),
        in_specs=(
            pl.BlockSpec((TM, TK), lambda i, j, k: (i, k)),
            pl.BlockSpec((TK, TN), lambda i, j, k: (k, j)),
        ),
        out_specs=(
            pl.BlockSpec((TM, TN), lambda i, j, k: (i, j)),
            pl.BlockSpec((1, 1, TN), lambda i, j, k: (i, 0, j)),
            pl.BlockSpec((1, 1, TN), lambda i, j, k: (i, 0, j)),
        ),
        out_shape=(
            jax.ShapeDtypeStruct((Mp, Cp), jnp.bfloat16),
            jax.ShapeDtypeStruct((nm, 1, Cp), jnp.float32),
            jax.ShapeDtypeStruct((nm, 1, Cp), jnp.float32),
        ),
        scratch_shapes=[pltpu.VMEM((TM, TN), jnp.float32)],
        compiler_params=_mosaic_params(
            ("parallel", "parallel", "arbitrary"), tile_bytes),
    )(a, b)

    ch_sum = jnp.sum(psum, axis=(0, 1))   # tiny (nm, Cp) reductions
    ch_ssq = jnp.sum(pssq, axis=(0, 1))
    return y, ch_sum, ch_ssq, M


# -----------------------------------------------------------------------------
# Kernel 2: fused BN affine (+ residual with its own BN affine) (+ ReLU)
# -----------------------------------------------------------------------------
def _bn_act_kernel(has_res, apply_relu, *refs):
    if has_res:
        y_ref, sc_ref, sh_ref, r_ref, rsc_ref, rsh_ref, o_ref = refs
    else:
        y_ref, sc_ref, sh_ref, o_ref = refs

    out = y_ref[...].astype(jnp.float32) * sc_ref[...] + sh_ref[...]
    if has_res:
        out = out + r_ref[...].astype(jnp.float32) * rsc_ref[...] + rsh_ref[...]
    if apply_relu:
        out = jnp.maximum(out, 0.0)
    o_ref[...] = out.astype(o_ref.dtype)


def _largest_divisor_tile(total, cap):
    for t in (2048, 1024, 512, 256, 128):
        if t <= cap and total % t == 0:
            return t
    return total


def bn_act(y, scale, shift, residual=None, res_scale=None, res_shift=None,
           apply_relu=True, out_dtype=jnp.float32):
    Mp, Cp = y.shape
    TM = _largest_divisor_tile(Mp, 2048)
    TN = _largest_divisor_tile(Cp, 512)

    tile = pl.BlockSpec((TM, TN), lambda i, j: (i, j))
    chan = pl.BlockSpec((1, TN), lambda i, j: (0, j))

    args = [y, scale.reshape(1, Cp), shift.reshape(1, Cp)]
    in_specs = [tile, chan, chan]
    tile_bytes = TM * TN * (y.dtype.itemsize + jnp.dtype(out_dtype).itemsize)
    if residual is not None:
        args += [residual, res_scale.reshape(1, Cp), res_shift.reshape(1, Cp)]
        in_specs += [tile, chan, chan]
        tile_bytes += TM * TN * residual.dtype.itemsize

    kernel = functools.partial(_bn_act_kernel, residual is not None, apply_relu)
    return pl.pallas_call(
        kernel,
        grid=(Mp // TM, Cp // TN),
        in_specs=in_specs,
        out_specs=tile,
        out_shape=jax.ShapeDtypeStruct((Mp, Cp), out_dtype),
        compiler_params=_mosaic_params(("parallel", "parallel"), tile_bytes),
    )(*args)


def bn_scale_shift(ch_sum, ch_ssq, n_rows, gamma, beta, eps=1e-5):
    """Fold training-mode BatchNorm batch statistics into per-channel
    scale/shift (f32); clamp the tiny negative variances E[y^2]-E[y]^2 can
    produce."""
    Cp = ch_sum.shape[0]
    g = jnp.pad(gamma.astype(jnp.float32), (0, Cp - gamma.shape[0]))
    b = jnp.pad(beta.astype(jnp.float32), (0, Cp - beta.shape[0]))
    mean = ch_sum / n_rows
    var = jnp.maximum(ch_ssq / n_rows - mean * mean, 0.0)
    scale = g * jax.lax.rsqrt(var + eps)
    shift = b - mean * scale
    return scale, shift


# -----------------------------------------------------------------------------
# Plain-JAX glue: im2col patch extraction, weight reshaping, param init
# -----------------------------------------------------------------------------
def im2col_parts(x_nhwc, ksize, stride, pad):
    """Return the 3x3 patch columns as a list of (M, C) chunks so the single
    concatenate (with K padding folded in) happens inside matmul_stats."""
    n, h, w, c = x_nhwc.shape
    xp = jnp.pad(x_nhwc, ((0, 0), (pad, pad), (pad, pad), (0, 0)))
    ho = (h + 2 * pad - ksize) // stride + 1
    wo = (w + 2 * pad - ksize) // stride + 1
    parts = []
    for ky in range(ksize):
        for kx in range(ksize):
            p = xp[:, ky:ky + stride * ho:stride, kx:kx + stride * wo:stride, :]
            parts.append(p.reshape(n * ho * wo, c))
    return parts, n * ho * wo, ksize * ksize * c, (n, ho, wo)


def conv_w_to_mm(w_oihw):
    """(Cout, Cin, KH, KW) -> (KH*KW*Cin, Cout), matching im2col column order."""
    c_out = w_oihw.shape[0]
    return jnp.transpose(w_oihw, (2, 3, 1, 0)).reshape(-1, c_out)


def init_params(key, in_channels, out_channels, stride):
    ks = jax.random.split(key, 8)

    def conv_init(k, shape):
        fan_in = shape[1] * shape[2] * shape[3]
        return jax.random.normal(k, shape, jnp.float32) / jnp.sqrt(fan_in)

    params = {
        "w1": conv_init(ks[0], (out_channels, in_channels, 3, 3)),
        "g1": 1.0 + 0.1 * jax.random.normal(ks[1], (out_channels,), jnp.float32),
        "b1": 0.1 * jax.random.normal(ks[2], (out_channels,), jnp.float32),
        "w2": conv_init(ks[3], (out_channels, out_channels, 3, 3)),
        "g2": 1.0 + 0.1 * jax.random.normal(ks[4], (out_channels,), jnp.float32),
        "b2": 0.1 * jax.random.normal(ks[5], (out_channels,), jnp.float32),
    }
    if stride != 1 or in_channels != out_channels:
        params["ws"] = conv_init(ks[6], (out_channels, in_channels, 1, 1))
        params["gs"] = 1.0 + 0.1 * jax.random.normal(ks[7], (out_channels,), jnp.float32)
        params["bs"] = 0.1 * jnp.ones((out_channels,), jnp.float32)
    return params


# -----------------------------------------------------------------------------
# BasicBlock forward
# -----------------------------------------------------------------------------
def basic_block_forward(x_nchw, params, in_channels, out_channels, stride, eps=1e-5):
    x = jnp.transpose(x_nchw, (0, 2, 3, 1))            # NCHW -> NHWC
    x_bf = x.astype(jnp.bfloat16)

    # conv1 (3x3, stride s, pad 1) + bn1 + relu
    p1, m1, k1, (n, ho, wo) = im2col_parts(x_bf, 3, stride, 1)
    y1, s1, ss1, _ = matmul_stats(p1, m1, k1, conv_w_to_mm(params["w1"]))
    sc1, sh1 = bn_scale_shift(s1, ss1, m1, params["g1"], params["b1"], eps)
    out1 = bn_act(y1, sc1, sh1, apply_relu=True, out_dtype=jnp.bfloat16)
    out1_nhwc = out1[:m1, :out_channels].reshape(n, ho, wo, out_channels)

    # conv2 (3x3, stride 1, pad 1) + bn2 (affine applied in the fused pass below)
    p2, m2, k2, _ = im2col_parts(out1_nhwc, 3, 1, 1)
    y2, s2, ss2, _ = matmul_stats(p2, m2, k2, conv_w_to_mm(params["w2"]))
    sc2, sh2 = bn_scale_shift(s2, ss2, m2, params["g2"], params["b2"], eps)
    Mp, Cp = y2.shape

    # shortcut — its BN affine is fused into the final elementwise pass so the
    # normalized shortcut never makes an extra HBM round trip.
    if stride != 1 or in_channels != out_channels:
        xs = x_bf[:, ::stride, ::stride, :].reshape(m2, in_channels)
        res, s_s, ss_s, _ = matmul_stats([xs], m2, in_channels,
                                         conv_w_to_mm(params["ws"]))
        if res.shape != (Mp, Cp):
            res = _pad_rows_cols(res[:Mp, :Cp], Mp, Cp)
        rsc, rsh = bn_scale_shift(s_s, ss_s, m2, params["gs"], params["bs"], eps)
    else:
        # bf16 residual: half the pad-copy write and the fused-pass read.
        res = _pad_rows_cols(x_bf.reshape(m2, in_channels), Mp, Cp)
        rsc = jnp.ones((Cp,), jnp.float32)
        rsh = jnp.zeros((Cp,), jnp.float32)

    # bn2 affine + shortcut affine + residual add + relu (single fused pass)
    out = bn_act(y2, sc2, sh2, residual=res, res_scale=rsc, res_shift=rsh,
                 apply_relu=True, out_dtype=jnp.float32)
    out_nhwc = out[:m2, :out_channels].reshape(n, ho, wo, out_channels)
    return jnp.transpose(out_nhwc, (0, 3, 1, 2))       # NHWC -> NCHW


# -----------------------------------------------------------------------------
# Pure-JAX f32 reference (lax conv) for a correctness cross-check
# -----------------------------------------------------------------------------
def _conv_ref(x_nhwc, w_oihw, stride, pad):
    return jax.lax.conv_general_dilated(
        x_nhwc, jnp.transpose(w_oihw, (2, 3, 1, 0)),
        window_strides=(stride, stride),
        padding=[(pad, pad), (pad, pad)],
        dimension_numbers=("NHWC", "HWIO", "NHWC"),
        preferred_element_type=jnp.float32)


def _bn_ref(y, gamma, beta, eps=1e-5):
    mean = jnp.mean(y, axis=(0, 1, 2), keepdims=True)
    var = jnp.mean(jnp.square(y - mean), axis=(0, 1, 2), keepdims=True)
    return (y - mean) * jax.lax.rsqrt(var + eps) * gamma + beta


def basic_block_ref(x_nchw, params, in_channels, out_channels, stride):
    x = jnp.transpose(x_nchw, (0, 2, 3, 1))
    out = jax.nn.relu(_bn_ref(_conv_ref(x, params["w1"], stride, 1),
                              params["g1"], params["b1"]))
    out = _bn_ref(_conv_ref(out, params["w2"], 1, 1), params["g2"], params["b2"])
    if stride != 1 or in_channels != out_channels:
        sc = _bn_ref(_conv_ref(x, params["ws"], stride, 0),
                     params["gs"], params["bs"])
    else:
        sc = x
    out = jax.nn.relu(out + sc)
    return jnp.transpose(out, (0, 3, 1, 2))


# -----------------------------------------------------------------------------
if __name__ == "__main__":
    key = jax.random.PRNGKey(0)
    k_x, k_p1, k_p2 = jax.random.split(key, 3)

    N, C_IN, H, W = 2, 4, 16, 16
    x = jax.random.normal(k_x, (N, C_IN, H, W), jnp.float32)  # NCHW like PyTorch

    # Tolerance accounts for bf16 MXU operands and the bf16 y intermediate vs
    # the pure-f32 reference.
    TOL = 5e-2

    # Case 1: identity shortcut (in==out, stride 1)
    p_id = init_params(k_p1, C_IN, C_IN, 1)
    y_id = basic_block_forward(x, p_id, C_IN, C_IN, 1)
    jax.block_until_ready(y_id)
    y_id_ref = basic_block_ref(x, p_id, C_IN, C_IN, 1)
    assert y_id.shape == (N, C_IN, H, W)
    assert jnp.allclose(y_id, y_id_ref, atol=TOL, rtol=TOL), \
        float(jnp.max(jnp.abs(y_id - y_id_ref)))

    # Case 2: projection shortcut (channel change + stride 2)
    C_OUT, STRIDE = 8, 2
    p_dn = init_params(k_p2, C_IN, C_OUT, STRIDE)
    y_dn = basic_block_forward(x, p_dn, C_IN, C_OUT, STRIDE)
    jax.block_until_ready(y_dn)
    y_dn_ref = basic_block_ref(x, p_dn, C_IN, C_OUT, STRIDE)
    assert y_dn.shape == (N, C_OUT, H // STRIDE, W // STRIDE)
    assert jnp.allclose(y_dn, y_dn_ref, atol=TOL, rtol=TOL), \
        float(jnp.max(jnp.abs(y_dn - y_dn_ref)))

    print("KERNEL_OK")
</pallas_src>

<mosaic_0001>
module attributes {stable_mosaic.version = 11 : i64} {
  func.func @_mm_stats_kernel(%arg0: i32, %arg1: i32, %arg2: i32, %arg3: memref<256x128xbf16, #tpu.memory_space<vmem>>, %arg4: memref<128x128xbf16, #tpu.memory_space<vmem>>, %arg5: memref<256x128xbf16, #tpu.memory_space<vmem>>, %arg6: memref<1x1x128xf32, #tpu.memory_space<vmem>>, %arg7: memref<1x1x128xf32, #tpu.memory_space<vmem>>, %arg8: memref<256x128xf32, #tpu.memory_space<vmem>>) attributes {dimension_semantics = [#tpu.dimension_semantics<parallel>, #tpu.dimension_semantics<parallel>, #tpu.dimension_semantics<arbitrary>], iteration_bounds = array<i64: 2, 1, 1>, scalar_prefetch = 0 : i64, scratch_operands = 1 : i64, tpu.core_type = #tpu.core_type<tc>, window_params = [{transform_indices = @transform_0, window_bounds = array<i64: 256, 128>}, {transform_indices = @transform_1, window_bounds = array<i64: 128, 128>}, {transform_indices = @transform_2, window_bounds = array<i64: 256, 128>}, {transform_indices = @transform_3, window_bounds = array<i64: 1, 1, 128>}, {transform_indices = @transform_4, window_bounds = array<i64: 1, 1, 128>}]} {
    %c0_i32 = arith.constant 0 : i32
    %0 = arith.cmpi eq, %arg2, %c0_i32 : i32
    %1 = arith.extui %0 : i1 to i32
    %c0_i32_0 = arith.constant 0 : i32
    %2 = arith.cmpi ne, %1, %c0_i32_0 : i32
    scf.if %2 {
      %cst_10 = arith.constant 0.000000e+00 : f32
      %12 = vector.broadcast %cst_10 : f32 to vector<256x128xf32>
      %c0_11 = arith.constant 0 : index
      %c0_12 = arith.constant 0 : index
      %13 = vector.load %arg8[%c0_11, %c0_12] : memref<256x128xf32, #tpu.memory_space<vmem>>, vector<256x128xf32>
      tpu.vector_store %arg8[%c0_11, %c0_12], %12 {strides = array<i32>} : memref<256x128xf32, #tpu.memory_space<vmem>>, vector<256x128xf32>,
    } else {
    }
    %c0 = arith.constant 0 : index
    %c0_1 = arith.constant 0 : index
    %3 = vector.load %arg8[%c0, %c0_1] : memref<256x128xf32, #tpu.memory_space<vmem>>, vector<256x128xf32>
    %c0_2 = arith.constant 0 : index
    %c0_3 = arith.constant 0 : index
    %4 = vector.load %arg3[%c0_2, %c0_3] : memref<256x128xbf16, #tpu.memory_space<vmem>>, vector<256x128xbf16>
    %c0_4 = arith.constant 0 : index
    %c0_5 = arith.constant 0 : index
    %5 = vector.load %arg4[%c0_4, %c0_5] : memref<128x128xbf16, #tpu.memory_space<vmem>>, vector<128x128xbf16>
    %cst = arith.constant dense<0.000000e+00> : vector<256x128xf32>
    %6 = tpu.matmul %4, %5, %cst {dimension_numbers = #tpu.dot_dimension_numbers<[1], [0], [0], [1], [0, 0, 1, 1], [], []>} : vector<256x128xbf16>, vector<128x128xbf16>, vector<256x128xf32> -> vector<256x128xf32>
    %7 = arith.addf %3, %6 : vector<256x128xf32>
    %c0_6 = arith.constant 0 : index
    %c0_7 = arith.constant 0 : index
    %8 = vector.load %arg8[%c0_6, %c0_7] : memref<256x128xf32, #tpu.memory_space<vmem>>, vector<256x128xf32>
    tpu.vector_store %arg8[%c0_6, %c0_7], %7 {strides = array<i32>} : memref<256x128xf32, #tpu.memory_space<vmem>>, vector<256x128xf32>,
    %c0_i32_8 = arith.constant 0 : i32
    %9 = arith.cmpi eq, %arg2, %c0_i32_8 : i32
    %10 = arith.extui %9 : i1 to i32
    %c0_i32_9 = arith.constant 0 : i32
    %11 = arith.cmpi ne, %10, %c0_i32_9 : i32
    scf.if %11 {
      %c0_10 = arith.constant 0 : index
      %c0_11 = arith.constant 0 : index
      %12 = vector.load %arg8[%c0_10, %c0_11] : memref<256x128xf32, #tpu.memory_space<vmem>>, vector<256x128xf32>
      %13 = arith.truncf %12 : vector<256x128xf32> to vector<256x128xbf16>
      %c0_12 = arith.constant 0 : index
      %c0_13 = arith.constant 0 : index
      %14 = vector.load %arg5[%c0_12, %c0_13] : memref<256x128xbf16, #tpu.memory_space<vmem>>, vector<256x128xbf16>
      tpu.vector_store %arg5[%c0_12, %c0_13], %13 {strides = array<i32>} : memref<256x128xbf16, #tpu.memory_space<vmem>>, vector<256x128xbf16>,
      %cst_14 = arith.constant dense<0.000000e+00> : vector<128xf32>
      %15 = vector.multi_reduction <add>, %12, %cst_14 [0] : vector<256x128xf32> to vector<128xf32>
      %16 = vector.shape_cast %15 : vector<128xf32> to vector<1x128xf32>
      %c0_15 = arith.constant 0 : index
      %c0_16 = arith.constant 0 : index
      %c0_17 = arith.constant 0 : index
      %17 = vector.load %arg6[%c0_15, %c0_16, %c0_17] : memref<1x1x128xf32, #tpu.memory_space<vmem>>, vector<1x1x128xf32>
      %18 = vector.shape_cast %17 : vector<1x1x128xf32> to vector<1x128xf32>
      %19 = vector.shape_cast %16 : vector<1x128xf32> to vector<1x1x128xf32>
      tpu.vector_store %arg6[%c0_15, %c0_16, %c0_17], %19 {strides = array<i32>} : memref<1x1x128xf32, #tpu.memory_space<vmem>>, vector<1x1x128xf32>,
      %20 = arith.mulf %12, %12 : vector<256x128xf32>
      %cst_18 = arith.constant dense<0.000000e+00> : vector<128xf32>
      %21 = vector.multi_reduction <add>, %20, %cst_18 [0] : vector<256x128xf32> to vector<128xf32>
      %22 = vector.shape_cast %21 : vector<128xf32> to vector<1x128xf32>
      %c0_19 = arith.constant 0 : index
      %c0_20 = arith.constant 0 : index
      %c0_21 = arith.constant 0 : index
      %23 = vector.load %arg7[%c0_19, %c0_20, %c0_21] : memref<1x1x128xf32, #tpu.memory_space<vmem>>, vector<1x1x128xf32>
      %24 = vector.shape_cast %23 : vector<1x1x128xf32> to vector<1x128xf32>
      %25 = vector.shape_cast %22 : vector<1x128xf32> to vector<1x1x128xf32>
      tpu.vector_store %arg7[%c0_19, %c0_20, %c0_21], %25 {strides = array<i32>} : memref<1x1x128xf32, #tpu.memory_space<vmem>>, vector<1x1x128xf32>,
    } else {
    }
    return
  }
  func.func @transform_0(%arg0: i32, %arg1: i32, %arg2: i32) -> (i32, i32) {
    %c0_i32 = arith.constant 0 : i32
    return %arg0, %arg2 : i32, i32
  }
  func.func @transform_1(%arg0: i32, %arg1: i32, %arg2: i32) -> (i32, i32) {
    %c0_i32 = arith.constant 0 : i32
    return %arg2, %arg1 : i32, i32
  }
  func.func @transform_2(%arg0: i32, %arg1: i32, %arg2: i32) -> (i32, i32) {
    %c0_i32 = arith.constant 0 : i32
    return %arg0, %arg1 : i32, i32
  }
  func.func @transform_3(%arg0: i32, %arg1: i32, %arg2: i32) -> (i32, i32, i32) {
    %c0_i32 = arith.constant 0 : i32
    %c0_i32_0 = arith.constant 0 : i32
    return %arg0, %c0_i32, %arg1 : i32, i32, i32
  }
  func.func @transform_4(%arg0: i32, %arg1: i32, %arg2: i32) -> (i32, i32, i32) {
    %c0_i32 = arith.constant 0 : i32
    %c0_i32_0 = arith.constant 0 : i32
    return %arg0, %c0_i32, %arg1 : i32, i32, i32
  }
}

</mosaic_0001>

<bundles_post_ra>
// kernel: tpu_custom_call.1
= control target key start
LH: loop header
LB: loop body
LE: loop exit
PB: predicated region body
PF: predicated region fallthrough
CT: control target
= control target key end

     0   :  { %s2090_s0 = inlined_call_operand.hbm [shape: bf16[512,128], index: 0, kind: input, shape index: {}]   ;;  %s2091_s1 = inlined_call_operand.hbm [shape: bf16[128,128], index: 1, kind: input, shape index: {}]   ;;  %s2092_s2 = inlined_call_operand.hbm [shape: bf16[512,128], index: 2, kind: output, shape index: {0}]   ;;  %s2093_s3 = inlined_call_operand.hbm [shape: f32[2,1,128], index: 3, kind: output, shape index: {1}]   ;;  %s2094_s4 = inlined_call_operand.hbm [shape: f32[2,1,128], index: 4, kind: output, shape index: {2}]  }
   0x1   :  { %2099 = sst [smem:[#allocation17_spill]] %s2091_s1 }
   0x2   :  { %10 = vsyncpa [#allocation4], 0 }
   0x3   :  { %12 = vsyncpa [#allocation4 + $0x1], 0 }
   0x4   :  { %13 = vsyncpa [#allocation7], 0 }
   0x5   :  { %14 = vsyncpa [#allocation5], 0 }
   0x6   :  { %16 = vsyncpa [#allocation5 + $0x1], 0 }
   0x7   :  { %17 = vsyncpa [#allocation10], 0 }
   0x8   :  { %19 = vsyncpa [#allocation10 + $0x1], 0  ;;  %s1706_s15 = smov 0   ;;  %s1708_s16 = smov 0  }
   0x9   :  { %s1710_s17 = smov 0   ;;  %s1712_s18 = smov 0  }
   0xa   :  { %s1714_s19 = smov 0   ;;  %s1716_s20 = smov 0  }
   0xb LB: > { %s1737_s21 = sadd.s32 4294967295, %s1674_s20   ;;  %s2095_s22 = sadd.s32 4294967294, %s1674_s20   ;;  %s1674_s20 = sphi %s1716_s20, %s25_s20   ;;  %s1670_s19 = sphi %s1714_s19, %s2115_s19   ;;  %s1666_s18 = sphi %s1712_s18, %s2114_s18   ;;  %s1662_s17 = sphi %s1710_s17, %s2113_s17   ;;  %s1658_s16 = sphi %s1708_s16, %s2112_s16   ;;  %s1654_s15 = sphi %s1706_s15, %s2111_s15  }
   0xc   : > { %p66_p0 = scmp.ne.s32.totalorder %s1658_s16, %s1654_s15  ;;  %p67_p1 = scmp.eq.s32.totalorder %s1737_s21, 0 }
   0xd   : > { %p120_p2 = scmp.eq.s32.totalorder %s1737_s21, 1  ;;  %p126_p3 = scmp.eq.s32.totalorder %s2095_s22, 1 }
   0xe   : > { %p1748_p4 = por %p67_p1, %p66_p0  ;;  %p1125_p5 = scmp.ge.s32.totalorder %s1674_s20, 1 }
   0xf   : > { %p1753_p6 = por %p126_p3, %p66_p0  ;;  %p189_p7 = scmp.lt.s32.totalorder %s1674_s20, 3 }
  0x10   : > { %s2102_s1 = sld [smem:[#allocation17_spill]]  ;;  %s1676_s29 = smov [#allocation6]  }
  0x11   : > { %p1761_p8 = pnand %p1125_p5, %p189_p7  ;;  %s206_s30 = sshll.u32 %s1676_s29, 4  ;;  %s207_s30 = int_to_ptr.vmem [resolvable:$true] %s206_s30 }
  0x12   : > { %p1127_p11 = scmp.ge.s32.totalorder %s1674_s20, 2  ;;  %s2096_s5 = smov 64  }
  0x13   : > { %p1393_p9 = pneg %p1761_p8  ;;  %s2097_s6 = smov 4  }
  0x14   : > { %s44_s7 = sadd.s32 1, %s1670_s19  ;;  %s53_s8 = sadd.s32 1, %s1662_s17 }
  0x15   : > { %p1394_p10 = pnand %p1393_p9, %p67_p1  ;;  %p46_p12 = scmp.ge.s32.totalorder %s44_s7, 2 }
  0x16   : > { %s204_s27 = sshll.u32 %s2102_s1, 4  ;;  %p60_p13 = scmp.ne.s32.totalorder %s1662_s17, %s1658_s16  ;;  %s205_s27 = int_to_ptr.hbm [resolvable:$true] %s204_s27 }
  0x17   : > { %1396 = dma.hbm_to_vmem [thread:$0]  (!%p1394_p10), %s205_s27, 1024, %s207_s30, [#allocation7], %s2096_s5, %s2096_s5, %s2097_s6  }
  0x18   : > { %p61_p0 = scmp.eq.s32.totalorder %s1674_s20, 0  ;;  %s2117_s7 = smov (%p46_p12, %s44_s7), 0 }
  0x19   : > { %2104 = sst [smem:[#allocation16_spill]] %s2117_s7  ;;  %p1786_p5 = por %p120_p2, %p60_p13 }
  0x1a   : > { %p1780_p3 = por %p61_p0, %p60_p13  ;;  %s48_s11 = ssub.s32 %s1670_s19, %s2117_s7 }
  0x1b   : > { %p1412_p7 = scmp.lt.s32.totalorder %s1674_s20, 2  ;;  %p51_p9 = scmp.eq.s32.totalorder %s48_s11, 0 }
  0x1c   : > { %s220_s12 = sand.u32 1, %s1662_s17   ;;  %s1236_s25 = sshll.u32 %s1670_s19, 7 }
  0x1d   : > { %s1128_s13 = sshll.u32 %s220_s12, 7  ;;  %s230_s29 = scalar_lea.hbm %s2090_s0, %s1236_s25 }
  0x1e   : > { %s1795_s14 = scalar_select %p51_p9, %s1662_s17, %s53_s8  }
  0x1f   : > { %s224_s30 = scalar_lea.vmem [#allocation3], %s1128_s13  ;;  %s231_s5 = sshll.u32 %s230_s29, 4  ;;  %s232_s5 = int_to_ptr.hbm [resolvable:$true] %s231_s5 }
  0x20   : > { %s233_s22 = sshll.u32 %s224_s30, 4  ;;  %p1398_p2 = pnand %p1412_p7, %p1780_p3  ;;  %s234_s22 = int_to_ptr.vmem [resolvable:$true] %s233_s22 }
  0x21   : > { %s221_s6 = scalar_lea.sflag [#allocation4], %s220_s12  ;;  %s2107_s1 = smov 4  }
  0x22   : > { %s2108_s7 = smov 64   ;;  %245 = sbr.rel (%p1761_p8) target bundleno = 333 (0x14d), region = 28 }
  0x23   : > { %1400 = dma.hbm_to_vmem [thread:$0]  (!%p1398_p2), %s232_s5, 2048, %s234_s22, %s221_s6, %s2108_s7, %s2108_s7, %s2107_s1  }
  0x24   : > { %s1809_s8 = sand.u32 (!%p1761_p8), 1, %s1658_s16  }
  0x25   : > { %s1132_s11 = sshll.u32 (!%p1761_p8), %s1809_s8, 7  ;;  %s248_s13 = scalar_lea.sflag (!%p1761_p8), [#allocation4], %s1809_s8 }
  0x26   : > { %s1815_s9 = scalar_lea.vmem (!%p1761_p8), [#allocation3], %s1132_s11 }
  0x27   : > { %1637 = dma.done.wait (%p1748_p4), %s248_s13, 2048  }
  0x28   : > { %1639 = vsyncadd (%p1748_p4), %s248_s13, 4294965248 }
  0x29   : > { %1641 = dma.done.wait (%p67_p1), [#allocation7], 1024  }
  0x2a   : > { %1643 = vsyncadd (%p67_p1), [#allocation7], 4294966272  ;;  %v1260_v0 = vld [vmem:[#allocation6 + $0x38] sm:$0xff]  ;;  %v1259_v1 = vld [vmem:[#allocation6 + $0x30] sm:$0xff]  ;;  %s1853_s1 = scalar_lea.vmem [#allocation8], %s1132_s11  ;;  %s1261_s22 = sshll.u32 %s1666_s18, 7 }
  0x2b   : > { %553 = vmatpush.bf16.msra.mxu0 %v1260_v0  ;;  %1357 = vmatpush.bf16.msra.mxu1 %v1260_v0  ;;  %v1258_v2 = vld [vmem:[#allocation6 + $0x28] sm:$0xff]  ;;  %v1257_v3 = vld [vmem:[#allocation6 + $0x20] sm:$0xff]  ;;  %v1256_v4 = vld [vmem:[#allocation6 + $0x18] sm:$0xff]  ;;  %s934_s5 = scalar_lea.hbm %s2092_s2, %s1261_s22  ;;  %s935_s6 = sshll.u32 %s1853_s1, 4  ;;  %s1940_s6 = int_to_ptr.vmem [resolvable:$true] %s935_s6 }
  0x2c   : > { %1358 = vmatpush.bf16.msra.mxu2 %v1260_v0  ;;  %1359 = vmatpush.bf16.msra.mxu3 %v1260_v0  ;;  %v1255_v5 = vld [vmem:[#allocation6 + $0x10] sm:$0xff]  ;;  %v1254_v6 = vld [vmem:[#allocation6 + $0x8] sm:$0xff]  ;;  %v1253_v7 = vld [vmem:[#allocation6] sm:$0xff]  ;;  %s937_s7 = sshll.u32 %s934_s5, 4  ;;  %s914_s12 = scalar_lea.sflag [#allocation5], %s1809_s8  ;;  %s1942_s7 = int_to_ptr.hbm [resolvable:$true] %s937_s7 }
  0x2d   : > { %v1237_v8 = vld [vmem:[%s1815_s9] sm:$0xff]  ;;  %v1238_v12 = vld [vmem:[%s1815_s9 + $0x8] sm:$0xff]  ;;  %v1239_v16 = vld [vmem:[%s1815_s9 + $0x10] sm:$0xff]  ;;  %s1542_s25 = sshra.s32 %s1942_s7, 4  ;;  %s1548_s30 = scalar_lea.hbm %s2092_s2, 256  ;;  %s1543_s25 = int_to_ptr.hbm [resolvable:$true] %s1542_s25 }
  0x2e   : > { %v1241_v9 = vld [vmem:[%s1815_s9 + $0x20] sm:$0xff]  ;;  %v1242_v13 = vld [vmem:[%s1815_s9 + $0x28] sm:$0xff]  ;;  %v1243_v17 = vld [vmem:[%s1815_s9 + $0x30] sm:$0xff]  ;;  %s1544_s26 = scalar_lea.hbm %s1543_s25, 128  ;;  %p1549_p10 = scmp.lt.s32.totalorder %s1543_s25, %s2092_s2 }
  0x2f   : > { %554 = vmatpush.bf16.msra.mxu0 %v1259_v1  ;;  %1360 = vmatpush.bf16.msra.mxu1 %v1259_v1  ;;  %v1245_v10 = vld [vmem:[%s1815_s9 + $0x40] sm:$0xff]  ;;  %v1246_v14 = vld [vmem:[%s1815_s9 + $0x48] sm:$0xff]  ;;  %v1247_v18 = vld [vmem:[%s1815_s9 + $0x50] sm:$0xff]  ;;  %p1545_p1 = scmp.ne.s32.totalorder %s1543_s25, %s1544_s26  ;;  %p1550_p12 = scmp.lt.s32.totalorder %s1548_s30, %s1544_s26 }
  0x30   : > { %1361 = vmatpush.bf16.msra.mxu2 %v1259_v1  ;;  %1362 = vmatpush.bf16.msra.mxu3 %v1259_v1  ;;  %v1249_v11 = vld [vmem:[%s1815_s9 + $0x60] sm:$0xff]  ;;  %v1250_v15 = vld [vmem:[%s1815_s9 + $0x68] sm:$0xff]  ;;  %v1251_v19 = vld [vmem:[%s1815_s9 + $0x70] sm:$0xff] }
  0x31   : > { %v1240_v20 = vld [vmem:[%s1815_s9 + $0x18] sm:$0xff]  ;;  %p1546_p4 = pnand %p1545_p1, %p1786_p5  ;;  %p1551_p13 = por %p1550_p12, %p1549_p10 }
  0x32   : > { %v1244_v21 = vld [vmem:[%s1815_s9 + $0x38] sm:$0xff] }
  0x33   : > { %555 = vmatpush.bf16.msra.mxu0 %v1258_v2  ;;  %1363 = vmatpush.bf16.msra.mxu1 %v1258_v2  ;;  %v1248_v22 = vld [vmem:[%s1815_s9 + $0x58] sm:$0xff]  ;;  %p1547_p8 = pneg %p1546_p4 }
  0x34   : > { %1364 = vmatpush.bf16.msra.mxu2 %v1258_v2  ;;  %1365 = vmatpush.bf16.msra.mxu3 %v1258_v2  ;;  %v1252_v23 = vld [vmem:[%s1815_s9 + $0x78] sm:$0xff] }
  0x35   : > { %p1552_p0 = pnand %p1551_p13, %p1547_p8 }
  0x37   : > { %556 = vmatpush.bf16.msra.mxu0 %v1257_v3  ;;  %1366 = vmatpush.bf16.msra.mxu1 %v1257_v3 }
  0x38   : > { %1367 = vmatpush.bf16.msra.mxu2 %v1257_v3  ;;  %1368 = vmatpush.bf16.msra.mxu3 %v1257_v3 }
  0x3b   : > { %557 = vmatpush.bf16.msra.mxu0 %v1256_v4  ;;  %1369 = vmatpush.bf16.msra.mxu1 %v1256_v4 }
  0x3c   : > { %1370 = vmatpush.bf16.msra.mxu2 %v1256_v4  ;;  %1371 = vmatpush.bf16.msra.mxu3 %v1256_v4 }
  0x3f   : > { %558 = vmatpush.bf16.msra.mxu0 %v1255_v5  ;;  %1372 = vmatpush.bf16.msra.mxu1 %v1255_v5 }
  0x40   : > { %1373 = vmatpush.bf16.msra.mxu2 %v1255_v5  ;;  %1374 = vmatpush.bf16.msra.mxu3 %v1255_v5 }
  0x43   : > { %559 = vmatpush.bf16.msra.mxu0 %v1254_v6  ;;  %1375 = vmatpush.bf16.msra.mxu1 %v1254_v6 }
  0x44   : > { %1376 = vmatpush.bf16.msra.mxu2 %v1254_v6  ;;  %1377 = vmatpush.bf16.msra.mxu3 %v1254_v6 }
  0x47   : > { %560 = vmatpush.bf16.msra.mxu0 %v1253_v7  ;;  %1378 = vmatpush.bf16.msra.mxu1 %v1253_v7 }
  0x48   : > { %1379 = vmatpush.bf16.msra.mxu2 %v1253_v7  ;;  %1380 = vmatpush.bf16.msra.mxu3 %v1253_v7 }
  0x4a   : > { %561 = vmatmul.bf16.vlgmr.msra.gmra.mxu0 %v1237_v8  ;;  %581 = vmatmul.bf16.vlgmr.msra.gmra.mxu1 %v1241_v9 }
  0x4b   : > { %601 = vmatmul.bf16.vlgmr.msra.gmra.mxu2 %v1245_v10  ;;  %621 = vmatmul.bf16.vlgmr.msra.gmra.mxu3 %v1249_v11 }
  0x5a   : > { %566 = vmatmul.bf16.gmra.mxu0 %v1238_v12  ;;  %586 = vmatmul.bf16.gmra.mxu1 %v1242_v13 }
  0x5b   : > { %606 = vmatmul.bf16.gmra.mxu2 %v1246_v14  ;;  %626 = vmatmul.bf16.gmra.mxu3 %v1250_v15 }
  0x6a   : > { %571 = vmatmul.bf16.gmra.mxu0 %v1239_v16  ;;  %591 = vmatmul.bf16.gmra.mxu1 %v1243_v17 }
  0x6b   : > { %611 = vmatmul.bf16.gmra.mxu2 %v1247_v18  ;;  %631 = vmatmul.bf16.gmra.mxu3 %v1251_v19 }
  0x7a   : > { %576 = vmatmul.bf16.gmra.mxu0 %v1240_v20  ;;  %596 = vmatmul.bf16.gmra.mxu1 %v1244_v21 }
  0x7b   : > { %616 = vmatmul.bf16.gmra.mxu2 %v1248_v22  ;;  %636 = vmatmul.bf16.gmra.mxu3 %v1252_v23 }
  0xc7   : > { %v562_v24 = vpop.f32.mrf.mxu0  ;;  %v1841_v25 = vpop.f32.mrf.mxu1 }
  0xc8   : > { %v843_v57 = vmul.f32 %v562_v24, %v562_v24 }
  0xce   : > { %v1843_v26 = vpop.f32.mrf.mxu2  ;;  %v1849_v31 = vpop.f32.mrf.mxu3 }
  0xcf   : > { %v564_v27 = vpop.f32.mrf.mxu0  ;;  %v1845_v28 = vpop.f32.mrf.mxu1 }
  0xd0   : > { %v1265_v29 = vpack.c.bf16 %v564_v27, %v562_v24  ;;  %v1285_v30 = vpack.c.bf16 %v1845_v28, %v1841_v25  ;;  %v844_v56 = vmul.f32 %v564_v27, %v564_v27  ;;  %v805_v59 = vadd.f32 %v564_v27, %v562_v24 }
  0xd1   : > { %v851_v27 = vmul.f32 %v1841_v25, %v1841_v25 }
  0xd2   : > { %1266 = vst [vmem:[%s1853_s1] sm:$0xff] %v1265_v29   ;;  %v875_v60 = vadd.f32 %v844_v56, %v843_v57 }
  0xd3   : > { %1345 = vst [vmem:[%s1853_s1 + $0x20] sm:$0xff] %v1285_v30  }
  0xd6   : > { %v1857_v32 = vpop.f32.mrf.mxu2  ;;  %v1863_v36 = vpop.f32.mrf.mxu3 }
  0xd7   : > { %v567_v33 = vpop.f32.mrf.mxu0  ;;  %v1859_v34 = vpop.f32.mrf.mxu1  ;;  %v1305_v35 = vpack.c.bf16 %v1857_v32, %v1843_v26  ;;  %v1325_v37 = vpack.c.bf16 %v1863_v36, %v1849_v31 }
  0xd8   : > { %v845_v58 = vmul.f32 %v567_v33, %v567_v33  ;;  %v806_v62 = vadd.f32 %v805_v59, %v567_v33 }
  0xd9   : > { %1349 = vst [vmem:[%s1853_s1 + $0x40] sm:$0xff] %v1305_v35  }
  0xda   : > { %1353 = vst [vmem:[%s1853_s1 + $0x60] sm:$0xff] %v1325_v37   ;;  %v876_v0 = vadd.f32 %v875_v60, %v845_v58 }
  0xde   : > { %v1869_v38 = vpop.f32.mrf.mxu2  ;;  %v1875_v43 = vpop.f32.mrf.mxu3 }
  0xdf   : > { %v569_v39 = vpop.f32.mrf.mxu0  ;;  %v1871_v40 = vpop.f32.mrf.mxu1 }
  0xe0   : > { %v1270_v41 = vpack.c.bf16 %v569_v39, %v567_v33  ;;  %v1290_v42 = vpack.c.bf16 %v1871_v40, %v1859_v34  ;;  %v846_v61 = vmul.f32 %v569_v39, %v569_v39  ;;  %v807_v5 = vadd.f32 %v806_v62, %v569_v39 }
  0xe1   : > { %v852_v33 = vmul.f32 %v1845_v28, %v1845_v28  ;;  %v853_v39 = vmul.f32 %v1859_v34, %v1859_v34 }
  0xe2   : > { %1342 = vst [vmem:[%s1853_s1 + $0x8] sm:$0xff] %v1270_v41   ;;  %v877_v7 = vadd.f32 %v876_v0, %v846_v61 }
  0xe3   : > { %1346 = vst [vmem:[%s1853_s1 + $0x28] sm:$0xff] %v1290_v42  }
  0xe6   : > { %v1879_v44 = vpop.f32.mrf.mxu2  ;;  %v1885_v48 = vpop.f32.mrf.mxu3 }
  0xe7   : > { %v572_v45 = vpop.f32.mrf.mxu0  ;;  %v1881_v46 = vpop.f32.mrf.mxu1  ;;  %v1310_v47 = vpack.c.bf16 %v1879_v44, %v1869_v38  ;;  %v1330_v49 = vpack.c.bf16 %v1885_v48, %v1875_v43 }
  0xe8   : > { %v847_v1 = vmul.f32 %v572_v45, %v572_v45  ;;  %v808_v10 = vadd.f32 %v807_v5, %v572_v45 }
  0xe9   : > { %1350 = vst [vmem:[%s1853_s1 + $0x48] sm:$0xff] %v1310_v47   ;;  %v854_v47 = vmul.f32 %v1871_v40, %v1871_v40 }
  0xea   : > { %1354 = vst [vmem:[%s1853_s1 + $0x68] sm:$0xff] %v1330_v49   ;;  %v878_v11 = vadd.f32 %v877_v7, %v847_v1 }
  0xee   : > { %v1891_v50 = vpop.f32.mrf.mxu2  ;;  %v1897_v55 = vpop.f32.mrf.mxu3 }
  0xef   : > { %v574_v51 = vpop.f32.mrf.mxu0  ;;  %v1893_v52 = vpop.f32.mrf.mxu1 }
  0xf0   : > { %v1275_v53 = vpack.c.bf16 %v574_v51, %v572_v45  ;;  %v1295_v54 = vpack.c.bf16 %v1893_v52, %v1881_v46  ;;  %v848_v8 = vmul.f32 %v574_v51, %v574_v51  ;;  %v809_v13 = vadd.f32 %v808_v10, %v574_v51 }
  0xf2   : > { %1343 = vst [vmem:[%s1853_s1 + $0x10] sm:$0xff] %v1275_v53   ;;  %v879_v14 = vadd.f32 %v878_v11, %v848_v8  ;;  %v855_v53 = vmul.f32 %v1881_v46, %v1881_v46 }
  0xf3   : > { %1347 = vst [vmem:[%s1853_s1 + $0x30] sm:$0xff] %v1295_v54  }
  0xf6   : > { %v1901_v63 = vpop.f32.mrf.mxu2  ;;  %v1907_v6 = vpop.f32.mrf.mxu3 }
  0xf7   : > { %v577_v2 = vpop.f32.mrf.mxu0  ;;  %v1903_v3 = vpop.f32.mrf.mxu1  ;;  %v1315_v4 = vpack.c.bf16 %v1901_v63, %v1891_v50  ;;  %v1335_v9 = vpack.c.bf16 %v1907_v6, %v1897_v55 }
  0xf8   : > { %v849_v12 = vmul.f32 %v577_v2, %v577_v2  ;;  %v810_v15 = vadd.f32 %v809_v13, %v577_v2 }
  0xf9   : > { %1351 = vst [vmem:[%s1853_s1 + $0x50] sm:$0xff] %v1315_v4  }
  0xfa   : > { %1355 = vst [vmem:[%s1853_s1 + $0x70] sm:$0xff] %v1335_v9   ;;  %v880_v17 = vadd.f32 %v879_v14, %v849_v12 }
  0xfe   : > { %v1913_v16 = vpop.f32.mrf.mxu2  ;;  %v1917_v24 = vpop.f32.mrf.mxu3 }
  0xff   : > { %v579_v18 = vpop.f32.mrf.mxu0  ;;  %v599_v19 = vpop.f32.mrf.mxu1 }
 0x100   : > { %v1280_v20 = vpack.c.bf16 %v579_v18, %v577_v2  ;;  %v811_v21 = vadd.f32 %v810_v15, %v579_v18  ;;  %v850_v22 = vmul.f32 %v579_v18, %v579_v18  ;;  %v1300_v23 = vpack.c.bf16 %v599_v19, %v1903_v3 }
 0x102   : > { %1344 = vst [vmem:[%s1853_s1 + $0x18] sm:$0xff] %v1280_v20   ;;  %v812_v29 = vadd.f32 %v811_v21, %v1841_v25  ;;  %v881_v30 = vadd.f32 %v880_v17, %v850_v22 }
 0x103   : > { %1348 = vst [vmem:[%s1853_s1 + $0x38] sm:$0xff] %v1300_v23  }
 0x104   : > { %v813_v35 = vadd.f32 %v812_v29, %v1845_v28  ;;  %v882_v37 = vadd.f32 %v881_v30, %v851_v27 }
 0x106   : > { %v814_v25 = vadd.f32 %v813_v35, %v1859_v34  ;;  %v883_v41 = vadd.f32 %v882_v37, %v852_v33  ;;  %v619_v42 = vpop.f32.mrf.mxu2  ;;  %v1938_v51 = vpop.f32.mrf.mxu3 }
 0x107   : > { %v1320_v45 = vpack.c.bf16 %v619_v42, %v1913_v16  ;;  %v1340_v34 = vpack.c.bf16 %v1938_v51, %v1917_v24 }
 0x108   : > { %v884_v49 = vadd.f32 %v883_v41, %v853_v39  ;;  %v815_v28 = vadd.f32 %v814_v25, %v1871_v40  ;;  %v856_v40 = vmul.f32 %v1893_v52, %v1893_v52 }
 0x109   : > { %1352 = vst [vmem:[%s1853_s1 + $0x58] sm:$0xff] %v1320_v45  }
 0x10a   : > { %v816_v54 = vadd.f32 %v815_v28, %v1881_v46  ;;  %v885_v56 = vadd.f32 %v884_v49, %v854_v47  ;;  %1356 = vst [vmem:[%s1853_s1 + $0x78] sm:$0xff] %v1340_v34  }
 0x10c   : > { %v817_v57 = vadd.f32 %v816_v54, %v1893_v52  ;;  %v886_v58 = vadd.f32 %v885_v56, %v855_v53 }
 0x10d   : > { %1555 = shalt.err (!%p1552_p0)
}
 0x10e   : > { %s1679_s9 = smov 64   ;;  %s1680_s1 = smov 4   ;;  %v818_v46 = vadd.f32 %v817_v57, %v1903_v3  ;;  %v857_v52 = vmul.f32 %v1903_v3, %v1903_v3  ;;  %v887_v59 = vadd.f32 %v886_v58, %v856_v40  ;;  %v858_v62 = vmul.f32 %v599_v19, %v599_v19 }
 0x10f   : > { %1387 = dma.vmem_to_hbm [thread:$0]  (%p1786_p5), %s1940_s6, 2048, %s1942_s7, %s914_s12, %s1679_s9, %s1679_s9, %s1680_s1   ;;  %v859_v0 = vmul.f32 %v1843_v26, %v1843_v26  ;;  %v860_v4 = vmul.f32 %v1857_v32, %v1857_v32  ;;  %v861_v8 = vmul.f32 %v1869_v38, %v1869_v38  ;;  %v862_v10 = vmul.f32 %v1879_v44, %v1879_v44 }
 0x110   : > { %v888_v60 = vadd.f32 %v887_v59, %v857_v52  ;;  %v819_v61 = vadd.f32 %v818_v46, %v599_v19  ;;  %v864_v15 = vmul.f32 %v1901_v63, %v1901_v63  ;;  %v865_v19 = vmul.f32 %v1913_v16, %v1913_v16  ;;  %s950_s28 = scalar_lea.hbm %s2093_s3, %s1666_s18  ;;  %s918_s5 = sand.u32 1, %s1737_s21  }
 0x111   : > { %v866_v21 = vmul.f32 %v619_v42, %v619_v42  ;;  %v867_v22 = vmul.f32 %v1849_v31, %v1849_v31  ;;  %v868_v27 = vmul.f32 %v1863_v36, %v1863_v36  ;;  %v869_v30 = vmul.f32 %v1875_v43, %v1875_v43  ;;  %s964_s12 = scalar_lea.hbm %s2094_s4, %s1666_s18  ;;  %s283_s25 = scalar_lea.vmem [#allocation9], %s1809_s8 }
 0x112   : > { %v820_v1 = vadd.f32 %v819_v61, %v1843_v26  ;;  %v889_v2 = vadd.f32 %v888_v60, %v858_v62  ;;  %v863_v26 = vmul.f32 %v1891_v50, %v1891_v50  ;;  %v870_v35 = vmul.f32 %v1885_v48, %v1885_v48  ;;  %s2026_s26 = sshll.u32 %s283_s25, 4  ;;  %s2028_s27 = sshll.u32 %s950_s28, 4  ;;  %s953_s26 = int_to_ptr.vmem [resolvable:$true] %s2026_s26  ;;  %s955_s27 = int_to_ptr.hbm [resolvable:$true] %s2028_s27 }
 0x113   : > { %v874_v28 = vmul.f32 %v1938_v51, %v1938_v51  ;;  %s289_s29 = scalar_lea.vmem [#allocation11], %s1809_s8  ;;  %s2033_s21 = sshll.u32 %s964_s12, 4  ;;  %s969_s21 = int_to_ptr.hbm [resolvable:$true] %s2033_s21 }
 0x114   : > { %v821_v5 = vadd.f32 %v820_v1, %v1857_v32  ;;  %v890_v7 = vadd.f32 %v889_v2, %v859_v0  ;;  %s2031_s30 = sshll.u32 %s289_s29, 4  ;;  %s919_s18 = scalar_lea.sflag [#allocation10], %s918_s5  ;;  %s967_s30 = int_to_ptr.vmem [resolvable:$true] %s2031_s30 }
 0x115   : > { %s1570_s11 = sshra.s32 %s955_s27, 4  ;;  %s1576_s1 = scalar_lea.hbm %s2093_s3, 2  ;;  %s1571_s11 = int_to_ptr.hbm [resolvable:$true] %s1570_s11 }
 0x116   : > { %v822_v3 = vadd.f32 %v821_v5, %v1869_v38  ;;  %v891_v9 = vadd.f32 %v890_v7, %v860_v4  ;;  %s1572_s13 = scalar_lea.hbm %s1571_s11, 1  ;;  %p1577_p2 = scmp.lt.s32.totalorder %s1571_s11, %s2093_s3 }
 0x117   : > { %p1573_p3 = scmp.ne.s32.totalorder %s1571_s11, %s1572_s13  ;;  %p1578_p1 = scmp.lt.s32.totalorder %s1576_s1, %s1572_s13 }
 0x118   : > { %v892_v11 = vadd.f32 %v891_v9, %v861_v8  ;;  %v823_v12 = vadd.f32 %v822_v3, %v1879_v44 }
 0x119   : > { %p1574_p7 = pnand %p1573_p3, %p1786_p5  ;;  %p1579_p4 = por %p1578_p1, %p1577_p2 }
 0x11a   : > { %v824_v13 = vadd.f32 %v823_v12, %v1891_v50  ;;  %v893_v14 = vadd.f32 %v892_v11, %v862_v10 }
 0x11b   : > { %p1575_p9 = pneg %p1574_p7 }
 0x11c   : > { %v825_v32 = vadd.f32 %v824_v13, %v1901_v63  ;;  %v894_v17 = vadd.f32 %v893_v14, %v863_v26 }
 0x11d   : > { %p1580_p8 = pnand %p1579_p4, %p1575_p9 }
 0x11e   : > { %v895_v38 = vadd.f32 %v894_v17, %v864_v15  ;;  %v826_v18 = vadd.f32 %v825_v32, %v1913_v16 }
 0x120   : > { %v896_v20 = vadd.f32 %v895_v38, %v865_v19  ;;  %v827_v44 = vadd.f32 %v826_v18, %v619_v42 }
 0x122   : > { %v828_v50 = vadd.f32 %v827_v44, %v1849_v31  ;;  %v897_v23 = vadd.f32 %v896_v20, %v866_v21  ;;  %v871_v31 = vmul.f32 %v1897_v55, %v1897_v55 }
 0x124   : > { %v829_v63 = vadd.f32 %v828_v50, %v1863_v36  ;;  %v898_v29 = vadd.f32 %v897_v23, %v867_v22 }
 0x126   : > { %v830_v16 = vadd.f32 %v829_v63, %v1875_v43  ;;  %v899_v33 = vadd.f32 %v898_v29, %v868_v27  ;;  %v872_v43 = vmul.f32 %v1907_v6, %v1907_v6 }
 0x128   : > { %v900_v37 = vadd.f32 %v899_v33, %v869_v30  ;;  %v831_v39 = vadd.f32 %v830_v16, %v1885_v48  ;;  %v873_v48 = vmul.f32 %v1917_v24, %v1917_v24 }
 0x12a   : > { %v832_v25 = vadd.f32 %v831_v39, %v1897_v55  ;;  %v901_v41 = vadd.f32 %v900_v37, %v870_v35 }
 0x12c   : > { %v833_v36 = vadd.f32 %v832_v25, %v1907_v6  ;;  %v902_v42 = vadd.f32 %v901_v41, %v871_v31 }
 0x12e   : > { %v903_v45 = vadd.f32 %v902_v42, %v872_v43  ;;  %v834_v47 = vadd.f32 %v833_v36, %v1917_v24 }
 0x130   : > { %v904_v49 = vadd.f32 %v903_v45, %v873_v48  ;;  %v835_v55 = vadd.f32 %v834_v47, %v1938_v51 }
 0x132   : > { %v836_v34 = vrot.slane %v835_v55, 4  ;;  %v905_v53 = vadd.f32 %v904_v49, %v874_v28 }
 0x134   : > { %v837_v54 = vadd.f32 %v836_v34, %v835_v55  ;;  %v906_v6 = vrot.slane %v905_v53, 4 }
 0x136   : > { %v838_v56 = vrot.slane %v837_v54, 2  ;;  %v907_v40 = vadd.f32 %v906_v6, %v905_v53 }
 0x138   : > { %v839_v57 = vadd.f32 %v838_v56, %v837_v54  ;;  %v908_v24 = vrot.slane %v907_v40, 2 }
 0x13a   : > { %v840_v51 = vrot.slane %v839_v57, 1  ;;  %v909_v58 = vadd.f32 %v908_v24, %v907_v40 }
 0x13c   : > { %v841_v46 = vadd.f32 %v840_v51, %v839_v57  ;;  %v910_v52 = vrot.slane %v909_v58, 1 }
 0x13e   : > { %v911_v59 = vadd.f32 %v910_v52, %v909_v58  ;;  %842 = vst [vmem:[%s283_s25] sm:$0x1] %v841_v46 }
 0x13f   : > { %1583 = shalt.err (!%p1580_p8)
}
 0x140   : > { %1388 = dma.vmem_to_hbm [thread:$0]  (%p1786_p5), %s953_s26, 16, %s955_s27, %s919_s18   ;;  %912 = vst [vmem:[%s289_s29] sm:$0x1] %v911_v59 }
 0x141   : > { %s1598_s28 = sshra.s32 %s969_s21, 4  ;;  %s1604_s12 = scalar_lea.hbm %s2094_s4, 2  ;;  %s1599_s28 = int_to_ptr.hbm [resolvable:$true] %s1598_s28 }
 0x142   : > { %s1600_s5 = scalar_lea.hbm %s1599_s28, 1  ;;  %p1605_p0 = scmp.lt.s32.totalorder %s1599_s28, %s2094_s4 }
 0x143   : > { %p1601_p10 = scmp.ne.s32.totalorder %s1599_s28, %s1600_s5  ;;  %p1606_p3 = scmp.lt.s32.totalorder %s1604_s12, %s1600_s5 }
 0x145   : > { %p1602_p12 = pnand %p1601_p10, %p1786_p5  ;;  %p1607_p7 = por %p1606_p3, %p1605_p0 }
 0x147   : > { %p1603_p13 = pneg %p1602_p12 }
 0x149   : > { %p1608_p9 = pnand %p1607_p7, %p1603_p13 }
 0x14b   : > { %1611 = shalt.err (!%p1608_p9)
}
 0x14c   : > { %1389 = dma.vmem_to_hbm [thread:$0]  (%p1786_p5), %s967_s30, 16, %s969_s21, %s919_s18  }
 0x14d PF: > { %s980_s26 = sand.u32 1, %s1654_s15   ;;  %p1402_p2 = pnand %p1127_p11, %p1753_p6 }
 0x14e   : > { %s981_s27 = scalar_lea.sflag [#allocation5], %s980_s26 }
 0x14f   : > { %p1403_p1 = pneg %p1402_p2 }
 0x151   : > { %1645 = dma.done.wait (%p1403_p1), %s981_s27, 2048  }
 0x152   : > { %1647 = vsyncadd (%p1403_p1), %s981_s27, 4294965248  ;;  %s2109_s29 = sadd.s32 4294967294, %s1674_s20  }
 0x153   : > { %s990_s10 = sand.u32 1, %s2109_s29  }
 0x154   : > { %s991_s13 = scalar_lea.sflag [#allocation10], %s990_s10 }
 0x155   : > { %1649 = dma.done.wait (%p1403_p1), %s991_s13, 32  }
 0x156   : > { %1651 = vsyncadd (%p1403_p1), %s991_s13, 4294967264  ;;  %s25_s20 = sadd.s32 1, %s1674_s20   ;;  %s2110_s24 = sld [smem:[#allocation16_spill]] }
 0x157   : > { %p22_p5 = scmp.ge.s32.totalorder %s25_s20, 4   ;;  %s2111_s15 = smov %s1658_s16 }
 0x158   : > { %s2112_s16 = smov %s1662_s17  ;;  %s2113_s17 = smov %s1795_s14 }
 0x159   : > { %s2114_s18 = smov %s1670_s19  ;;  %24 = sbr.rel (!%p22_p5) target bundleno = 11 (0xb), region = 118 }
 0x15c   : > { %s2115_s19 = smov %s2110_s24 }
 0x15e   :  { %1005 = vsyncpa [#allocation4], 1 }
 0x15f   :  { %1007 = vsyncpa [#allocation4 + $0x1], 1 }
 0x160   :  { %1008 = vsyncpa [#allocation7], 1 }
 0x161   :  { %1009 = vsyncpa [#allocation5], 1 }
 0x162   :  { %1011 = vsyncpa [#allocation5 + $0x1], 1 }
 0x163   :  { %1012 = vsyncpa [#allocation10], 1 }
 0x164   :  { %1014 = vsyncpa [#allocation10 + $0x1], 1 }

</bundles_post_ra>
